<compile_context>
chip_gen: v5e
topology: v5e:2x2
jax: 0.10.0
libtpu: 0.0.40
codegen_flags: <defaults>
</compile_context>

<pallas_src>
import math
import numpy as np
import jax
import jax.numpy as jnp
from jax import lax
from jax.experimental import pallas as pl
from jax.experimental.pallas import tpu as pltpu


# ---------------------------------------------------------------------------
# Mask construction (mirror of create_masks with input_order='sequential')
# ---------------------------------------------------------------------------
def create_masks_np(input_size, hidden_size, n_hidden, input_degrees=None):
    degrees = []
    degrees.append(np.arange(input_size) if input_degrees is None
                   else np.asarray(input_degrees))
    for _ in range(n_hidden + 1):
        degrees.append(np.arange(hidden_size) % (input_size - 1))
    if input_degrees is None:
        degrees.append(np.arange(input_size) % input_size - 1)
    else:
        degrees.append(np.asarray(input_degrees) % input_size - 1)
    masks = [(d1[:, None] >= d0[None, :]).astype(np.float32)
             for d0, d1 in zip(degrees[:-1], degrees[1:])]
    return masks, degrees[0]


# ---------------------------------------------------------------------------
# Deterministic parameter construction (weights pre-masked, pre-transposed,
# matmul operands stored in bf16; biases / BN params stay f32)
# ---------------------------------------------------------------------------
def build_params(key, n_blocks, n_components, L, H, n_hidden):
    keys = iter(jax.random.split(key, 128))
    C = n_components

    def lin(out_f, in_f, mask=None):
        k1, k2 = next(keys), next(keys)
        bound = 1.0 / math.sqrt(in_f)
        W = jax.random.uniform(k1, (out_f, in_f), jnp.float32, -bound, bound)
        b = jax.random.uniform(k2, (1, out_f), jnp.float32, -bound, bound)
        if mask is not None:
            W = W * jnp.asarray(mask, jnp.float32)
        return W.T, b                      # pre-transposed: (in_f, out_f)

    bf16 = lambda w: w.astype(jnp.bfloat16)

    W0s, b0s, Whs, bhs = [], [], [], []
    Wms, bms, Wlas, blas = [], [], [], []
    lgs, bts = [], []
    cur = None
    for _ in range(n_blocks):
        masks, d0 = create_masks_np(L, H, n_hidden, cur)
        cur = d0[::-1].copy()                        # input_degrees.flip(0)
        W, b = lin(H, L, masks[0]); W0s.append(bf16(W)); b0s.append(b)
        wh, bh = [], []
        for m in masks[1:-1]:
            W, b = lin(H, H, m); wh.append(bf16(W)); bh.append(b)
        Whs.append(jnp.stack(wh)); bhs.append(jnp.stack(bh))
        # joint (H, 2L) output layer split into lane-contiguous m / loga halves
        Wo, bo = lin(2 * L, H, np.tile(masks[-1], (2, 1)))
        Wms.append(bf16(Wo[:, :L]));  bms.append(bo[:, :L])
        Wlas.append(bf16(Wo[:, L:])); blas.append(bo[:, L:])
        lgs.append(jnp.zeros((1, L), jnp.float32))   # BatchNorm log_gamma
        bts.append(jnp.zeros((1, L), jnp.float32))   # BatchNorm beta

    # MADEMOG uses the degrees handed down from the MAF stack
    masks, _ = create_masks_np(L, H, n_hidden, cur)
    Wg0, bg0 = lin(H, L, masks[0]); Wg0 = bf16(Wg0)
    wgh, bgh = [], []
    for m in masks[1:-1]:
        W, b = lin(H, H, m); wgh.append(bf16(W)); bgh.append(b)
    # Full MoG head is (H, C*3L): per component [m | loga | logw].  The forward
    # never uses logw -> drop that third; permute the remaining columns to
    # [m for all C | loga for all C] so the tail is two lane-contiguous matmuls.
    Wg, bg = lin(C * 3 * L, H, np.tile(masks[-1], (C * 3, 1)))
    m_cols = np.concatenate([np.arange(c * 3 * L, c * 3 * L + L) for c in range(C)])
    la_cols = np.concatenate([np.arange(c * 3 * L + L, c * 3 * L + 2 * L) for c in range(C)])
    Wgm, bgm = bf16(Wg[:, m_cols]), bg[:, m_cols]
    Wgla, bgla = bf16(Wg[:, la_cols]), bg[:, la_cols]

    lgs = jnp.stack(lgs)
    exp_lgs = jnp.exp(lgs)                 # exp(log_gamma) precomputed once

    return [jnp.stack(W0s), jnp.stack(b0s), jnp.stack(Whs), jnp.stack(bhs),
            jnp.stack(Wms), jnp.stack(bms), jnp.stack(Wlas), jnp.stack(blas),
            lgs, exp_lgs, jnp.stack(bts),
            Wg0, bg0, jnp.stack(wgh), jnp.stack(bgh), Wgm, bgm, Wgla, bgla]


# ---------------------------------------------------------------------------
# Pallas kernel: whole MAFMOG forward in one invocation (tiny VMEM-resident
# problem; see TODO above for the batch-tiled variant)
# ---------------------------------------------------------------------------
def make_kernel(n_blocks, n_hidden, C, L, eps, N):
    inv_n = 1.0 / N
    inv_nm1 = 1.0 / (N - 1)

    def kernel(x_ref, W0s, b0s, Whs, bhs, Wms, bms, Wlas, blas,
               lgs, elgs, bts, Wg0, bg0, Wghs, bghs, Wgm, bgm, Wgla, bgla,
               u_ref, ld_ref):
        x = x_ref[...]                                       # (N, L) f32
        sum_ld = jnp.zeros_like(x)

        # ---- MAF: n_blocks x (MADE + BatchNorm) ----
        for b in range(n_blocks):
            h = jnp.dot(x.astype(jnp.bfloat16), W0s[b],
                        preferred_element_type=jnp.float32) + b0s[b]
            for j in range(n_hidden):
                h = jnp.maximum(h, 0.0)
                h = jnp.dot(h.astype(jnp.bfloat16), Whs[b, j],
                            preferred_element_type=jnp.float32) + bhs[b, j]
            hb = jnp.maximum(h, 0.0).astype(jnp.bfloat16)
            m = jnp.dot(hb, Wms[b], preferred_element_type=jnp.float32) + bms[b]
            loga = jnp.dot(hb, Wlas[b], preferred_element_type=jnp.float32) + blas[b]
            u = (x - m) * jnp.exp(-loga)
            sum_ld = sum_ld - loga

            # BatchNorm (training mode): fused one-pass stats, unbiased var
            s = jnp.sum(u, axis=0, keepdims=True)
            ss = jnp.sum(u * u, axis=0, keepdims=True)
            mean = s * inv_n
            var = (ss - N * mean * mean) * inv_nm1
            inv_std = lax.rsqrt(var + eps)                   # EUP slot
            x = elgs[b] * (u - mean) * inv_std + bts[b]
            sum_ld = sum_ld + (lgs[b] + jnp.log(inv_std))    # == lg - 0.5*log(var+eps)

        # ---- MADEMOG (vectorized tail, lane-contiguous stores) ----
        h = jnp.dot(x.astype(jnp.bfloat16), Wg0[...],
                    preferred_element_type=jnp.float32) + bg0[...]
        for j in range(n_hidden):
            h = jnp.maximum(h, 0.0)
            h = jnp.dot(h.astype(jnp.bfloat16), Wghs[j],
                        preferred_element_type=jnp.float32) + bghs[j]
        hb = jnp.maximum(h, 0.0).astype(jnp.bfloat16)
        m_all = jnp.dot(hb, Wgm[...], preferred_element_type=jnp.float32) + bgm[...]
        la_all = jnp.dot(hb, Wgla[...], preferred_element_type=jnp.float32) + bgla[...]

        x_rep = jnp.tile(x, (1, C))                          # (N, C*L)
        u_ref[...] = (x_rep - m_all) * jnp.exp(-la_all)
        ld_ref[...] = jnp.tile(sum_ld, (1, C)) - la_all

    return kernel


def mafmog_forward(x, params, *, n_blocks, n_hidden, C, L, eps=1e-5):
    N = x.shape[0]
    H = params[0].shape[-1]
    kernel = make_kernel(n_blocks, n_hidden, C, L, eps, N)
    ins = [x] + list(params)
    vmem = pl.BlockSpec(memory_space=pltpu.MemorySpace.VMEM)

    # Advisory cost estimate for XLA scheduling around the custom call.
    flops = 2 * N * (n_blocks * (L * H + n_hidden * H * H + 2 * H * L)
                     + (L * H + n_hidden * H * H + 2 * H * C * L))
    transcendentals = N * L * (2 * n_blocks + 1 + C) + 2 * n_blocks * L
    bytes_accessed = (sum(int(np.prod(a.shape)) * a.dtype.itemsize for a in ins)
                      + 2 * N * C * L * 4)
    cost = pl.CostEstimate(flops=flops, transcendentals=transcendentals,
                           bytes_accessed=bytes_accessed)

    u_flat, ld_flat = pl.pallas_call(
        kernel,
        out_shape=(jax.ShapeDtypeStruct((N, C * L), jnp.float32),
                   jax.ShapeDtypeStruct((N, C * L), jnp.float32)),
        in_specs=[vmem] * len(ins),
        out_specs=(vmem, vmem),
        cost_estimate=cost,
    )(*ins)
    return u_flat.reshape(N, C, L), ld_flat.reshape(N, C, L)


# ---------------------------------------------------------------------------
# Pure-JAX reference with identical mixed precision (bf16 matmul operands,
# f32 accumulation / elementwise), two-pass unbiased variance.
# ---------------------------------------------------------------------------
def reference(x, params, *, n_blocks, n_hidden, C, L, eps=1e-5):
    (W0s, b0s, Whs, bhs, Wms, bms, Wlas, blas, lgs, exp_lgs, bts,
     Wg0, bg0, Wghs, bghs, Wgm, bgm, Wgla, bgla) = params
    N = x.shape[0]
    dot = lambda a, w: jnp.dot(a.astype(jnp.bfloat16), w,
                               preferred_element_type=jnp.float32)
    sum_ld = jnp.zeros_like(x)
    for b in range(n_blocks):
        h = dot(x, W0s[b]) + b0s[b]
        for j in range(n_hidden):
            h = dot(jnp.maximum(h, 0.0), Whs[b, j]) + bhs[b, j]
        h = jnp.maximum(h, 0.0)
        m = dot(h, Wms[b]) + bms[b]
        loga = dot(h, Wlas[b]) + blas[b]
        u = (x - m) * jnp.exp(-loga)
        sum_ld = sum_ld - loga
        mean = u.mean(0, keepdims=True)
        var = ((u - mean) ** 2).sum(0, keepdims=True) / (N - 1)   # torch.var default (unbiased)
        x = exp_lgs[b] * (u - mean) / jnp.sqrt(var + eps) + bts[b]
        sum_ld = sum_ld + (lgs[b] - 0.5 * jnp.log(var + eps))
    h = dot(x, Wg0) + bg0
    for j in range(n_hidden):
        h = dot(jnp.maximum(h, 0.0), Wghs[j]) + bghs[j]
    h = jnp.maximum(h, 0.0)
    m_all = dot(h, Wgm) + bgm
    la_all = dot(h, Wgla) + bgla
    u = (jnp.tile(x, (1, C)) - m_all) * jnp.exp(-la_all)
    ld = jnp.tile(sum_ld, (1, C)) - la_all
    return u.reshape(N, C, L), ld.reshape(N, C, L)


if __name__ == "__main__":
    # Small config consistent with MAFMOG(n_blocks, n_components, input_size,
    # hidden_size, n_hidden)
    n_blocks, C, L, H, n_hidden = 2, 3, 8, 32, 1
    N = 16

    key = jax.random.PRNGKey(0)
    kp, kx = jax.random.split(key)
    params = build_params(kp, n_blocks, C, L, H, n_hidden)
    x = jax.random.normal(kx, (N, L), jnp.float32)

    u, ld = mafmog_forward(x, params, n_blocks=n_blocks, n_hidden=n_hidden, C=C, L=L)
    jax.block_until_ready((u, ld))

    u_ref, ld_ref = reference(x, params, n_blocks=n_blocks, n_hidden=n_hidden, C=C, L=L)
    np.testing.assert_allclose(np.asarray(u), np.asarray(u_ref), rtol=1e-2, atol=1e-2)
    np.testing.assert_allclose(np.asarray(ld), np.asarray(ld_ref), rtol=1e-2, atol=1e-2)

    assert u.shape == (N, C, L) and ld.shape == (N, C, L)
    print("KERNEL_OK")
</pallas_src>

<mosaic_0001>
module attributes {stable_mosaic.version = 11 : i64} {
  func.func @kernel(%arg0: memref<16x8xf32, #tpu.memory_space<vmem>>, %arg1: memref<2x8x32xbf16, #tpu.memory_space<vmem>>, %arg2: memref<2x1x32xf32, #tpu.memory_space<vmem>>, %arg3: memref<2x1x32x32xbf16, #tpu.memory_space<vmem>>, %arg4: memref<2x1x1x32xf32, #tpu.memory_space<vmem>>, %arg5: memref<2x32x8xbf16, #tpu.memory_space<vmem>>, %arg6: memref<2x1x8xf32, #tpu.memory_space<vmem>>, %arg7: memref<2x32x8xbf16, #tpu.memory_space<vmem>>, %arg8: memref<2x1x8xf32, #tpu.memory_space<vmem>>, %arg9: memref<2x1x8xf32, #tpu.memory_space<vmem>>, %arg10: memref<2x1x8xf32, #tpu.memory_space<vmem>>, %arg11: memref<2x1x8xf32, #tpu.memory_space<vmem>>, %arg12: memref<8x32xbf16, #tpu.memory_space<vmem>>, %arg13: memref<1x32xf32, #tpu.memory_space<vmem>>, %arg14: memref<1x32x32xbf16, #tpu.memory_space<vmem>>, %arg15: memref<1x1x32xf32, #tpu.memory_space<vmem>>, %arg16: memref<32x24xbf16, #tpu.memory_space<vmem>>, %arg17: memref<1x24xf32, #tpu.memory_space<vmem>>, %arg18: memref<32x24xbf16, #tpu.memory_space<vmem>>, %arg19: memref<1x24xf32, #tpu.memory_space<vmem>>, %arg20: memref<16x24xf32, #tpu.memory_space<vmem>>, %arg21: memref<16x24xf32, #tpu.memory_space<vmem>>) attributes {dimension_semantics = [], scalar_prefetch = 0 : i64, scratch_operands = 0 : i64, tpu.core_type = #tpu.core_type<tc>} {
    %c0 = arith.constant 0 : index
    %c0_0 = arith.constant 0 : index
    %0 = vector.load %arg0[%c0, %c0_0] : memref<16x8xf32, #tpu.memory_space<vmem>>, vector<16x8xf32>
    %cst = arith.constant 0.000000e+00 : f32
    %1 = vector.broadcast %cst : f32 to vector<16x8xf32>
    %2 = arith.truncf %0 : vector<16x8xf32> to vector<16x8xbf16>
    %c0_1 = arith.constant 0 : index
    %c0_2 = arith.constant 0 : index
    %c0_3 = arith.constant 0 : index
    %3 = vector.load %arg1[%c0_1, %c0_2, %c0_3] : memref<2x8x32xbf16, #tpu.memory_space<vmem>>, vector<1x8x32xbf16>
    %4 = vector.shape_cast %3 : vector<1x8x32xbf16> to vector<8x32xbf16>
    %cst_4 = arith.constant dense<0.000000e+00> : vector<16x32xf32>
    %5 = tpu.matmul %2, %4, %cst_4 {dimension_numbers = #tpu.dot_dimension_numbers<[1], [0], [0], [1], [0, 0, 1, 1], [], []>} : vector<16x8xbf16>, vector<8x32xbf16>, vector<16x32xf32> -> vector<16x32xf32>
    %c0_5 = arith.constant 0 : index
    %c0_6 = arith.constant 0 : index
    %c0_7 = arith.constant 0 : index
    %6 = vector.load %arg2[%c0_5, %c0_6, %c0_7] : memref<2x1x32xf32, #tpu.memory_space<vmem>>, vector<1x1x32xf32>
    %7 = vector.shape_cast %6 : vector<1x1x32xf32> to vector<1x32xf32>
    %8 = vector.broadcast %7 : vector<1x32xf32> to vector<16x32xf32>
    %9 = arith.addf %5, %8 : vector<16x32xf32>
    %cst_8 = arith.constant 0.000000e+00 : f32
    %10 = vector.broadcast %cst_8 : f32 to vector<16x32xf32>
    %11 = arith.maximumf %9, %10 : vector<16x32xf32>
    %12 = arith.truncf %11 : vector<16x32xf32> to vector<16x32xbf16>
    %c0_9 = arith.constant 0 : index
    %c0_10 = arith.constant 0 : index
    %c0_11 = arith.constant 0 : index
    %c0_12 = arith.constant 0 : index
    %13 = vector.load %arg3[%c0_9, %c0_10, %c0_11, %c0_12] : memref<2x1x32x32xbf16, #tpu.memory_space<vmem>>, vector<1x1x32x32xbf16>
    %14 = vector.shape_cast %13 : vector<1x1x32x32xbf16> to vector<32x32xbf16>
    %cst_13 = arith.constant dense<0.000000e+00> : vector<16x32xf32>
    %15 = tpu.matmul %12, %14, %cst_13 {dimension_numbers = #tpu.dot_dimension_numbers<[1], [0], [0], [1], [0, 0, 1, 1], [], []>} : vector<16x32xbf16>, vector<32x32xbf16>, vector<16x32xf32> -> vector<16x32xf32>
    %c0_14 = arith.constant 0 : index
    %c0_15 = arith.constant 0 : index
    %c0_16 = arith.constant 0 : index
    %c0_17 = arith.constant 0 : index
    %16 = vector.load %arg4[%c0_14, %c0_15, %c0_16, %c0_17] : memref<2x1x1x32xf32, #tpu.memory_space<vmem>>, vector<1x1x1x32xf32>
    %17 = vector.shape_cast %16 : vector<1x1x1x32xf32> to vector<1x32xf32>
    %18 = vector.broadcast %17 : vector<1x32xf32> to vector<16x32xf32>
    %19 = arith.addf %15, %18 : vector<16x32xf32>
    %cst_18 = arith.constant 0.000000e+00 : f32
    %20 = vector.broadcast %cst_18 : f32 to vector<16x32xf32>
    %21 = arith.maximumf %19, %20 : vector<16x32xf32>
    %22 = arith.truncf %21 : vector<16x32xf32> to vector<16x32xbf16>
    %c0_19 = arith.constant 0 : index
    %c0_20 = arith.constant 0 : index
    %c0_21 = arith.constant 0 : index
    %23 = vector.load %arg5[%c0_19, %c0_20, %c0_21] : memref<2x32x8xbf16, #tpu.memory_space<vmem>>, vector<1x32x8xbf16>
    %24 = vector.shape_cast %23 : vector<1x32x8xbf16> to vector<32x8xbf16>
    %cst_22 = arith.constant dense<0.000000e+00> : vector<16x8xf32>
    %25 = tpu.matmul %22, %24, %cst_22 {dimension_numbers = #tpu.dot_dimension_numbers<[1], [0], [0], [1], [0, 0, 1, 1], [], []>} : vector<16x32xbf16>, vector<32x8xbf16>, vector<16x8xf32> -> vector<16x8xf32>
    %c0_23 = arith.constant 0 : index
    %c0_24 = arith.constant 0 : index
    %c0_25 = arith.constant 0 : index
    %26 = vector.load %arg6[%c0_23, %c0_24, %c0_25] : memref<2x1x8xf32, #tpu.memory_space<vmem>>, vector<1x1x8xf32>
    %27 = vector.shape_cast %26 : vector<1x1x8xf32> to vector<1x8xf32>
    %28 = vector.broadcast %27 : vector<1x8xf32> to vector<16x8xf32>
    %29 = arith.addf %25, %28 : vector<16x8xf32>
    %c0_26 = arith.constant 0 : index
    %c0_27 = arith.constant 0 : index
    %c0_28 = arith.constant 0 : index
    %30 = vector.load %arg7[%c0_26, %c0_27, %c0_28] : memref<2x32x8xbf16, #tpu.memory_space<vmem>>, vector<1x32x8xbf16>
    %31 = vector.shape_cast %30 : vector<1x32x8xbf16> to vector<32x8xbf16>
    %cst_29 = arith.constant dense<0.000000e+00> : vector<16x8xf32>
    %32 = tpu.matmul %22, %31, %cst_29 {dimension_numbers = #tpu.dot_dimension_numbers<[1], [0], [0], [1], [0, 0, 1, 1], [], []>} : vector<16x32xbf16>, vector<32x8xbf16>, vector<16x8xf32> -> vector<16x8xf32>
    %c0_30 = arith.constant 0 : index
    %c0_31 = arith.constant 0 : index
    %c0_32 = arith.constant 0 : index
    %33 = vector.load %arg8[%c0_30, %c0_31, %c0_32] : memref<2x1x8xf32, #tpu.memory_space<vmem>>, vector<1x1x8xf32>
    %34 = vector.shape_cast %33 : vector<1x1x8xf32> to vector<1x8xf32>
    %35 = vector.broadcast %34 : vector<1x8xf32> to vector<16x8xf32>
    %36 = arith.addf %32, %35 : vector<16x8xf32>
    %37 = arith.subf %0, %29 : vector<16x8xf32>
    %cst_33 = arith.constant 0.000000e+00 : f32
    %38 = vector.broadcast %cst_33 : f32 to vector<16x8xf32>
    %39 = arith.subf %38, %36 : vector<16x8xf32>
    %40 = math.exp %39 : vector<16x8xf32>
    %41 = arith.mulf %37, %40 : vector<16x8xf32>
    %42 = arith.subf %1, %36 : vector<16x8xf32>
    %cst_34 = arith.constant dense<0.000000e+00> : vector<8xf32>
    %43 = vector.multi_reduction <add>, %41, %cst_34 [0] : vector<16x8xf32> to vector<8xf32>
    %44 = vector.shape_cast %43 : vector<8xf32> to vector<1x8xf32>
    %45 = arith.mulf %41, %41 : vector<16x8xf32>
    %cst_35 = arith.constant dense<0.000000e+00> : vector<8xf32>
    %46 = vector.multi_reduction <add>, %45, %cst_35 [0] : vector<16x8xf32> to vector<8xf32>
    %47 = vector.shape_cast %46 : vector<8xf32> to vector<1x8xf32>
    %cst_36 = arith.constant 6.250000e-02 : f32
    %48 = vector.broadcast %cst_36 : f32 to vector<1x8xf32>
    %49 = arith.mulf %44, %48 : vector<1x8xf32>
    %cst_37 = arith.constant 1.600000e+01 : f32
    %50 = vector.broadcast %cst_37 : f32 to vector<1x8xf32>
    %51 = arith.mulf %50, %49 : vector<1x8xf32>
    %52 = arith.mulf %51, %49 : vector<1x8xf32>
    %53 = arith.subf %47, %52 : vector<1x8xf32>
    %cst_38 = arith.constant 0.0666666701 : f32
    %54 = vector.broadcast %cst_38 : f32 to vector<1x8xf32>
    %55 = arith.mulf %53, %54 : vector<1x8xf32>
    %cst_39 = arith.constant 9.99999974E-6 : f32
    %56 = vector.broadcast %cst_39 : f32 to vector<1x8xf32>
    %57 = arith.addf %55, %56 : vector<1x8xf32>
    %58 = math.rsqrt %57 : vector<1x8xf32>
    %c0_40 = arith.constant 0 : index
    %c0_41 = arith.constant 0 : index
    %c0_42 = arith.constant 0 : index
    %59 = vector.load %arg10[%c0_40, %c0_41, %c0_42] : memref<2x1x8xf32, #tpu.memory_space<vmem>>, vector<1x1x8xf32>
    %60 = vector.shape_cast %59 : vector<1x1x8xf32> to vector<1x8xf32>
    %61 = vector.broadcast %49 : vector<1x8xf32> to vector<16x8xf32>
    %62 = arith.subf %41, %61 : vector<16x8xf32>
    %63 = vector.broadcast %60 : vector<1x8xf32> to vector<16x8xf32>
    %64 = arith.mulf %63, %62 : vector<16x8xf32>
    %65 = vector.broadcast %58 : vector<1x8xf32> to vector<16x8xf32>
    %66 = arith.mulf %64, %65 : vector<16x8xf32>
    %c0_43 = arith.constant 0 : index
    %c0_44 = arith.constant 0 : index
    %c0_45 = arith.constant 0 : index
    %67 = vector.load %arg11[%c0_43, %c0_44, %c0_45] : memref<2x1x8xf32, #tpu.memory_space<vmem>>, vector<1x1x8xf32>
    %68 = vector.shape_cast %67 : vector<1x1x8xf32> to vector<1x8xf32>
    %69 = vector.broadcast %68 : vector<1x8xf32> to vector<16x8xf32>
    %70 = arith.addf %66, %69 : vector<16x8xf32>
    %c0_46 = arith.constant 0 : index
    %c0_47 = arith.constant 0 : index
    %c0_48 = arith.constant 0 : index
    %71 = vector.load %arg9[%c0_46, %c0_47, %c0_48] : memref<2x1x8xf32, #tpu.memory_space<vmem>>, vector<1x1x8xf32>
    %72 = vector.shape_cast %71 : vector<1x1x8xf32> to vector<1x8xf32>
    %73 = math.log %58 : vector<1x8xf32>
    %74 = arith.addf %72, %73 : vector<1x8xf32>
    %75 = vector.broadcast %74 : vector<1x8xf32> to vector<16x8xf32>
    %76 = arith.addf %42, %75 : vector<16x8xf32>
    %77 = arith.truncf %70 : vector<16x8xf32> to vector<16x8xbf16>
    %c1 = arith.constant 1 : index
    %c0_49 = arith.constant 0 : index
    %c0_50 = arith.constant 0 : index
    %78 = vector.load %arg1[%c1, %c0_49, %c0_50] : memref<2x8x32xbf16, #tpu.memory_space<vmem>>, vector<1x8x32xbf16>
    %79 = vector.shape_cast %78 : vector<1x8x32xbf16> to vector<8x32xbf16>
    %cst_51 = arith.constant dense<0.000000e+00> : vector<16x32xf32>
    %80 = tpu.matmul %77, %79, %cst_51 {dimension_numbers = #tpu.dot_dimension_numbers<[1], [0], [0], [1], [0, 0, 1, 1], [], []>} : vector<16x8xbf16>, vector<8x32xbf16>, vector<16x32xf32> -> vector<16x32xf32>
    %c1_52 = arith.constant 1 : index
    %c0_53 = arith.constant 0 : index
    %c0_54 = arith.constant 0 : index
    %81 = vector.load %arg2[%c1_52, %c0_53, %c0_54] : memref<2x1x32xf32, #tpu.memory_space<vmem>>, vector<1x1x32xf32>
    %82 = vector.shape_cast %81 : vector<1x1x32xf32> to vector<1x32xf32>
    %83 = vector.broadcast %82 : vector<1x32xf32> to vector<16x32xf32>
    %84 = arith.addf %80, %83 : vector<16x32xf32>
    %cst_55 = arith.constant 0.000000e+00 : f32
    %85 = vector.broadcast %cst_55 : f32 to vector<16x32xf32>
    %86 = arith.maximumf %84, %85 : vector<16x32xf32>
    %87 = arith.truncf %86 : vector<16x32xf32> to vector<16x32xbf16>
    %c1_56 = arith.constant 1 : index
    %c0_57 = arith.constant 0 : index
    %c0_58 = arith.constant 0 : index
    %c0_59 = arith.constant 0 : index
    %88 = vector.load %arg3[%c1_56, %c0_57, %c0_58, %c0_59] : memref<2x1x32x32xbf16, #tpu.memory_space<vmem>>, vector<1x1x32x32xbf16>
    %89 = vector.shape_cast %88 : vector<1x1x32x32xbf16> to vector<32x32xbf16>
    %cst_60 = arith.constant dense<0.000000e+00> : vector<16x32xf32>
    %90 = tpu.matmul %87, %89, %cst_60 {dimension_numbers = #tpu.dot_dimension_numbers<[1], [0], [0], [1], [0, 0, 1, 1], [], []>} : vector<16x32xbf16>, vector<32x32xbf16>, vector<16x32xf32> -> vector<16x32xf32>
    %c1_61 = arith.constant 1 : index
    %c0_62 = arith.constant 0 : index
    %c0_63 = arith.constant 0 : index
    %c0_64 = arith.constant 0 : index
    %91 = vector.load %arg4[%c1_61, %c0_62, %c0_63, %c0_64] : memref<2x1x1x32xf32, #tpu.memory_space<vmem>>, vector<1x1x1x32xf32>
    %92 = vector.shape_cast %91 : vector<1x1x1x32xf32> to vector<1x32xf32>
    %93 = vector.broadcast %92 : vector<1x32xf32> to vector<16x32xf32>
    %94 = arith.addf %90, %93 : vector<16x32xf32>
    %cst_65 = arith.constant 0.000000e+00 : f32
    %95 = vector.broadcast %cst_65 : f32 to vector<16x32xf32>
    %96 = arith.maximumf %94, %95 : vector<16x32xf32>
    %97 = arith.truncf %96 : vector<16x32xf32> to vector<16x32xbf16>
    %c1_66 = arith.constant 1 : index
    %c0_67 = arith.constant 0 : index
    %c0_68 = arith.constant 0 : index
    %98 = vector.load %arg5[%c1_66, %c0_67, %c0_68] : memref<2x32x8xbf16, #tpu.memory_space<vmem>>, vector<1x32x8xbf16>
    %99 = vector.shape_cast %98 : vector<1x32x8xbf16> to vector<32x8xbf16>
    %cst_69 = arith.constant dense<0.000000e+00> : vector<16x8xf32>
    %100 = tpu.matmul %97, %99, %cst_69 {dimension_numbers = #tpu.dot_dimension_numbers<[1], [0], [0], [1], [0, 0, 1, 1], [], []>} : vector<16x32xbf16>, vector<32x8xbf16>, vector<16x8xf32> -> vector<16x8xf32>
    %c1_70 = arith.constant 1 : index
    %c0_71 = arith.constant 0 : index
    %c0_72 = arith.constant 0 : index
    %101 = vector.load %arg6[%c1_70, %c0_71, %c0_72] : memref<2x1x8xf32, #tpu.memory_space<vmem>>, vector<1x1x8xf32>
    %102 = vector.shape_cast %101 : vector<1x1x8xf32> to vector<1x8xf32>
    %103 = vector.broadcast %102 : vector<1x8xf32> to vector<16x8xf32>
    %104 = arith.addf %100, %103 : vector<16x8xf32>
    %c1_73 = arith.constant 1 : index
    %c0_74 = arith.constant 0 : index
    %c0_75 = arith.constant 0 : index
    %105 = vector.load %arg7[%c1_73, %c0_74, %c0_75] : memref<2x32x8xbf16, #tpu.memory_space<vmem>>, vector<1x32x8xbf16>
    %106 = vector.shape_cast %105 : vector<1x32x8xbf16> to vector<32x8xbf16>
    %cst_76 = arith.constant dense<0.000000e+00> : vector<16x8xf32>
    %107 = tpu.matmul %97, %106, %cst_76 {dimension_numbers = #tpu.dot_dimension_numbers<[1], [0], [0], [1], [0, 0, 1, 1], [], []>} : vector<16x32xbf16>, vector<32x8xbf16>, vector<16x8xf32> -> vector<16x8xf32>
    %c1_77 = arith.constant 1 : index
    %c0_78 = arith.constant 0 : index
    %c0_79 = arith.constant 0 : index
    %108 = vector.load %arg8[%c1_77, %c0_78, %c0_79] : memref<2x1x8xf32, #tpu.memory_space<vmem>>, vector<1x1x8xf32>
    %109 = vector.shape_cast %108 : vector<1x1x8xf32> to vector<1x8xf32>
    %110 = vector.broadcast %109 : vector<1x8xf32> to vector<16x8xf32>
    %111 = arith.addf %107, %110 : vector<16x8xf32>
    %112 = arith.subf %70, %104 : vector<16x8xf32>
    %cst_80 = arith.constant 0.000000e+00 : f32
    %113 = vector.broadcast %cst_80 : f32 to vector<16x8xf32>
    %114 = arith.subf %113, %111 : vector<16x8xf32>
    %115 = math.exp %114 : vector<16x8xf32>
    %116 = arith.mulf %112, %115 : vector<16x8xf32>
    %117 = arith.subf %76, %111 : vector<16x8xf32>
    %cst_81 = arith.constant dense<0.000000e+00> : vector<8xf32>
    %118 = vector.multi_reduction <add>, %116, %cst_81 [0] : vector<16x8xf32> to vector<8xf32>
    %119 = vector.shape_cast %118 : vector<8xf32> to vector<1x8xf32>
    %120 = arith.mulf %116, %116 : vector<16x8xf32>
    %cst_82 = arith.constant dense<0.000000e+00> : vector<8xf32>
    %121 = vector.multi_reduction <add>, %120, %cst_82 [0] : vector<16x8xf32> to vector<8xf32>
    %122 = vector.shape_cast %121 : vector<8xf32> to vector<1x8xf32>
    %cst_83 = arith.constant 6.250000e-02 : f32
    %123 = vector.broadcast %cst_83 : f32 to vector<1x8xf32>
    %124 = arith.mulf %119, %123 : vector<1x8xf32>
    %cst_84 = arith.constant 1.600000e+01 : f32
    %125 = vector.broadcast %cst_84 : f32 to vector<1x8xf32>
    %126 = arith.mulf %125, %124 : vector<1x8xf32>
    %127 = arith.mulf %126, %124 : vector<1x8xf32>
    %128 = arith.subf %122, %127 : vector<1x8xf32>
    %cst_85 = arith.constant 0.0666666701 : f32
    %129 = vector.broadcast %cst_85 : f32 to vector<1x8xf32>
    %130 = arith.mulf %128, %129 : vector<1x8xf32>
    %cst_86 = arith.constant 9.99999974E-6 : f32
    %131 = vector.broadcast %cst_86 : f32 to vector<1x8xf32>
    %132 = arith.addf %130, %131 : vector<1x8xf32>
    %133 = math.rsqrt %132 : vector<1x8xf32>
    %c1_87 = arith.constant 1 : index
    %c0_88 = arith.constant 0 : index
    %c0_89 = arith.constant 0 : index
    %134 = vector.load %arg10[%c1_87, %c0_88, %c0_89] : memref<2x1x8xf32, #tpu.memory_space<vmem>>, vector<1x1x8xf32>
    %135 = vector.shape_cast %134 : vector<1x1x8xf32> to vector<1x8xf32>
    %136 = vector.broadcast %124 : vector<1x8xf32> to vector<16x8xf32>
    %137 = arith.subf %116, %136 : vector<16x8xf32>
    %138 = vector.broadcast %135 : vector<1x8xf32> to vector<16x8xf32>
    %139 = arith.mulf %138, %137 : vector<16x8xf32>
    %140 = vector.broadcast %133 : vector<1x8xf32> to vector<16x8xf32>
    %141 = arith.mulf %139, %140 : vector<16x8xf32>
    %c1_90 = arith.constant 1 : index
    %c0_91 = arith.constant 0 : index
    %c0_92 = arith.constant 0 : index
    %142 = vector.load %arg11[%c1_90, %c0_91, %c0_92] : memref<2x1x8xf32, #tpu.memory_space<vmem>>, vector<1x1x8xf32>
    %143 = vector.shape_cast %142 : vector<1x1x8xf32> to vector<1x8xf32>
    %144 = vector.broadcast %143 : vector<1x8xf32> to vector<16x8xf32>
    %145 = arith.addf %141, %144 : vector<16x8xf32>
    %c1_93 = arith.constant 1 : index
    %c0_94 = arith.constant 0 : index
    %c0_95 = arith.constant 0 : index
    %146 = vector.load %arg9[%c1_93, %c0_94, %c0_95] : memref<2x1x8xf32, #tpu.memory_space<vmem>>, vector<1x1x8xf32>
    %147 = vector.shape_cast %146 : vector<1x1x8xf32> to vector<1x8xf32>
    %148 = math.log %133 : vector<1x8xf32>
    %149 = arith.addf %147, %148 : vector<1x8xf32>
    %150 = vector.broadcast %149 : vector<1x8xf32> to vector<16x8xf32>
    %151 = arith.addf %117, %150 : vector<16x8xf32>
    %152 = arith.truncf %145 : vector<16x8xf32> to vector<16x8xbf16>
    %c0_96 = arith.constant 0 : index
    %c0_97 = arith.constant 0 : index
    %153 = vector.load %arg12[%c0_96, %c0_97] : memref<8x32xbf16, #tpu.memory_space<vmem>>, vector<8x32xbf16>
    %cst_98 = arith.constant dense<0.000000e+00> : vector<16x32xf32>
    %154 = tpu.matmul %152, %153, %cst_98 {dimension_numbers = #tpu.dot_dimension_numbers<[1], [0], [0], [1], [0, 0, 1, 1], [], []>} : vector<16x8xbf16>, vector<8x32xbf16>, vector<16x32xf32> -> vector<16x32xf32>
    %c0_99 = arith.constant 0 : index
    %c0_100 = arith.constant 0 : index
    %155 = vector.load %arg13[%c0_99, %c0_100] : memref<1x32xf32, #tpu.memory_space<vmem>>, vector<1x32xf32>
    %156 = vector.broadcast %155 : vector<1x32xf32> to vector<16x32xf32>
    %157 = arith.addf %154, %156 : vector<16x32xf32>
    %cst_101 = arith.constant 0.000000e+00 : f32
    %158 = vector.broadcast %cst_101 : f32 to vector<16x32xf32>
    %159 = arith.maximumf %157, %158 : vector<16x32xf32>
    %160 = arith.truncf %159 : vector<16x32xf32> to vector<16x32xbf16>
    %c0_102 = arith.constant 0 : index
    %c0_103 = arith.constant 0 : index
    %c0_104 = arith.constant 0 : index
    %161 = vector.load %arg14[%c0_102, %c0_103, %c0_104] : memref<1x32x32xbf16, #tpu.memory_space<vmem>>, vector<1x32x32xbf16>
    %162 = vector.shape_cast %161 : vector<1x32x32xbf16> to vector<32x32xbf16>
    %cst_105 = arith.constant dense<0.000000e+00> : vector<16x32xf32>
    %163 = tpu.matmul %160, %162, %cst_105 {dimension_numbers = #tpu.dot_dimension_numbers<[1], [0], [0], [1], [0, 0, 1, 1], [], []>} : vector<16x32xbf16>, vector<32x32xbf16>, vector<16x32xf32> -> vector<16x32xf32>
    %c0_106 = arith.constant 0 : index
    %c0_107 = arith.constant 0 : index
    %c0_108 = arith.constant 0 : index
    %164 = vector.load %arg15[%c0_106, %c0_107, %c0_108] : memref<1x1x32xf32, #tpu.memory_space<vmem>>, vector<1x1x32xf32>
    %165 = vector.shape_cast %164 : vector<1x1x32xf32> to vector<1x32xf32>
    %166 = vector.broadcast %165 : vector<1x32xf32> to vector<16x32xf32>
    %167 = arith.addf %163, %166 : vector<16x32xf32>
    %cst_109 = arith.constant 0.000000e+00 : f32
    %168 = vector.broadcast %cst_109 : f32 to vector<16x32xf32>
    %169 = arith.maximumf %167, %168 : vector<16x32xf32>
    %170 = arith.truncf %169 : vector<16x32xf32> to vector<16x32xbf16>
    %c0_110 = arith.constant 0 : index
    %c0_111 = arith.constant 0 : index
    %171 = vector.load %arg16[%c0_110, %c0_111] : memref<32x24xbf16, #tpu.memory_space<vmem>>, vector<32x24xbf16>
    %cst_112 = arith.constant dense<0.000000e+00> : vector<16x24xf32>
    %172 = tpu.matmul %170, %171, %cst_112 {dimension_numbers = #tpu.dot_dimension_numbers<[1], [0], [0], [1], [0, 0, 1, 1], [], []>} : vector<16x32xbf16>, vector<32x24xbf16>, vector<16x24xf32> -> vector<16x24xf32>
    %c0_113 = arith.constant 0 : index
    %c0_114 = arith.constant 0 : index
    %173 = vector.load %arg17[%c0_113, %c0_114] : memref<1x24xf32, #tpu.memory_space<vmem>>, vector<1x24xf32>
    %174 = vector.broadcast %173 : vector<1x24xf32> to vector<16x24xf32>
    %175 = arith.addf %172, %174 : vector<16x24xf32>
    %c0_115 = arith.constant 0 : index
    %c0_116 = arith.constant 0 : index
    %176 = vector.load %arg18[%c0_115, %c0_116] : memref<32x24xbf16, #tpu.memory_space<vmem>>, vector<32x24xbf16>
    %cst_117 = arith.constant dense<0.000000e+00> : vector<16x24xf32>
    %177 = tpu.matmul %170, %176, %cst_117 {dimension_numbers = #tpu.dot_dimension_numbers<[1], [0], [0], [1], [0, 0, 1, 1], [], []>} : vector<16x32xbf16>, vector<32x24xbf16>, vector<16x24xf32> -> vector<16x24xf32>
    %c0_118 = arith.constant 0 : index
    %c0_119 = arith.constant 0 : index
    %178 = vector.load %arg19[%c0_118, %c0_119] : memref<1x24xf32, #tpu.memory_space<vmem>>, vector<1x24xf32>
    %179 = vector.broadcast %178 : vector<1x24xf32> to vector<16x24xf32>
    %180 = arith.addf %177, %179 : vector<16x24xf32>
    %181 = tpu.concatenate %145, %145, %145 in 1 : vector<16x8xf32>, vector<16x8xf32>, vector<16x8xf32> -> vector<16x24xf32>
    %182 = arith.subf %181, %175 : vector<16x24xf32>
    %cst_120 = arith.constant 0.000000e+00 : f32
    %183 = vector.broadcast %cst_120 : f32 to vector<16x24xf32>
    %184 = arith.subf %183, %180 : vector<16x24xf32>
    %185 = math.exp %184 : vector<16x24xf32>
    %186 = arith.mulf %182, %185 : vector<16x24xf32>
    %c0_121 = arith.constant 0 : index
    %c0_122 = arith.constant 0 : index
    %187 = vector.load %arg20[%c0_121, %c0_122] : memref<16x24xf32, #tpu.memory_space<vmem>>, vector<16x24xf32>
    tpu.vector_store %arg20[%c0_121, %c0_122], %186 {strides = array<i32>} : memref<16x24xf32, #tpu.memory_space<vmem>>, vector<16x24xf32>,
    %188 = tpu.concatenate %151, %151, %151 in 1 : vector<16x8xf32>, vector<16x8xf32>, vector<16x8xf32> -> vector<16x24xf32>
    %189 = arith.subf %188, %180 : vector<16x24xf32>
    %c0_123 = arith.constant 0 : index
    %c0_124 = arith.constant 0 : index
    %190 = vector.load %arg21[%c0_123, %c0_124] : memref<16x24xf32, #tpu.memory_space<vmem>>, vector<16x24xf32>
    tpu.vector_store %arg21[%c0_123, %c0_124], %189 {strides = array<i32>} : memref<16x24xf32, #tpu.memory_space<vmem>>, vector<16x24xf32>,
    return
  }
}

</mosaic_0001>

<bundles_post_ra>
// kernel: tpu_custom_call.1
= control target key start
LH: loop header
LB: loop body
LE: loop exit
PB: predicated region body
PF: predicated region fallthrough
CT: control target
= control target key end

     0   :  { %s1299_s0 = inlined_call_operand.vmem [shape: f32[16,8], index: 0, kind: input, shape index: {}]   ;;  %s1300_s1 = inlined_call_operand.vmem [shape: bf16[2,8,32], index: 1, kind: input, shape index: {}]   ;;  %s1301_s2 = inlined_call_operand.vmem [shape: f32[2,1,32], index: 2, kind: input, shape index: {}]   ;;  %s1302_s3 = inlined_call_operand.vmem [shape: bf16[2,1,32,32], index: 3, kind: input, shape index: {}]   ;;  %s1303_s4 = inlined_call_operand.vmem [shape: f32[2,1,1,32], index: 4, kind: input, shape index: {}]   ;;  %s1304_s5 = inlined_call_operand.vmem [shape: bf16[2,32,8], index: 5, kind: input, shape index: {}]   ;;  %s1305_s6 = inlined_call_operand.vmem [shape: f32[2,1,8], index: 6, kind: input, shape index: {}]   ;;  %s1306_s7 = inlined_call_operand.vmem [shape: bf16[2,32,8], index: 7, kind: input, shape index: {}]   ;;  %s1307_s8 = inlined_call_operand.vmem [shape: f32[2,1,8], index: 8, kind: input, shape index: {}]   ;;  %s1308_s9 = inlined_call_operand.vmem [shape: f32[2,1,8], index: 9, kind: input, shape index: {}]   ;;  %s1309_s10 = inlined_call_operand.vmem [shape: f32[2,1,8], index: 10, kind: input, shape index: {}]   ;;  %s1310_s11 = inlined_call_operand.vmem [shape: f32[2,1,8], index: 11, kind: input, shape index: {}]   ;;  %s1311_s12 = inlined_call_operand.vmem [shape: bf16[8,32], index: 12, kind: input, shape index: {}]   ;;  %s1312_s13 = inlined_call_operand.vmem [shape: f32[1,32], index: 13, kind: input, shape index: {}]   ;;  %s1313_s14 = inlined_call_operand.vmem [shape: bf16[1,32,32], index: 14, kind: input, shape index: {}]   ;;  %s1314_s15 = inlined_call_operand.vmem [shape: f32[1,1,32], index: 15, kind: input, shape index: {}]   ;;  %s1315_s16 = inlined_call_operand.vmem [shape: bf16[32,24], index: 16, kind: input, shape index: {}]   ;;  %s1316_s17 = inlined_call_operand.vmem [shape: f32[1,24], index: 17, kind: input, shape index: {}]   ;;  %s1317_s18 = inlined_call_operand.vmem [shape: bf16[32,24], index: 18, kind: input, shape index: {}]   ;;  %s1318_s19 = inlined_call_operand.vmem [shape: f32[1,24], index: 19, kind: input, shape index: {}]   ;;  %s1319_s20 = inlined_call_operand.hbm [shape: f32[16,24], index: 20, kind: output, shape index: {0}]   ;;  %s1320_s21 = inlined_call_operand.hbm [shape: f32[16,24], index: 21, kind: output, shape index: {1}]  }
   0x1   :  { %1327 = sst [smem:[#allocation8_spill]] %s1299_s0 }
   0x2   :  { %1328 = sst [smem:[#allocation9_spill]] %s1300_s1 }
   0x3   :  { %1329 = sst [smem:[#allocation10_spill]] %s1301_s2 }
   0x4   :  { %1330 = sst [smem:[#allocation11_spill]] %s1302_s3 }
   0x5   :  { %1331 = sst [smem:[#allocation12_spill]] %s1303_s4 }
   0x6   :  { %1332 = sst [smem:[#allocation13_spill]] %s1304_s5 }
   0x7   :  { %27 = vsyncpa [#allocation3], 0  ;;  %s1333_s26 = sld [smem:[#allocation9_spill]]  ;;  %vm82_vm0 = vcmask 1043456   ;;  %vm78_vm1 = vcmask 64512  }
   0x8   :  { %s1334_s28 = sld [smem:[#allocation8_spill]] }
   0xd   :  { %v73_v0 = vld [vmem:[%s1333_s26] sm:$0xf] }
   0xe   :  { %v70_v1 = vld [vmem:[%s1334_s28] sm:$0xff]  ;;  %v71_v2 = vld [vmem:[%s1334_s28 + $0x8] sm:$0xff]  ;;  %v84_v3 = vsel %vm82_vm0, %v73_v0, 0 }
   0xf   :  { %v72_v4 = vpack.c.bf16 %v71_v2, %v70_v1  ;;  %93 = vmatpush.bf16.msra.mxu0 %v84_v3 }
  0x12   :  { %740 = vmatmul.msk.bf16.vlgmr.msra.gmra.mxu0 %vm78_vm1, %v72_v4 }
  0x13   :  { %28 = vsyncpa [#allocation5], 0  ;;  %s1335_s5 = sld [smem:[#allocation11_spill]]  ;;  %vm123_vm2 = vcmask 261120   ;;  %v849_v16 = vld [vmem:[%s1306_s7 + $0x8] sm:$0xff]  ;;  %v848_v18 = vld [vmem:[%s1306_s7] sm:$0xff] }
  0x14   :  { %s1336_s2 = sld [smem:[#allocation10_spill]]  ;;  %207 = vmatpush.bf16.msra.mxu3 %v849_v16  ;;  %v870_v27 = vld [vmem:[%s1307_s8] ss:$0 sm:$0xff]  ;;  %s956_s22 = smov 8   ;;  %vm666_vm9 = vcmask 130048   ;;  %vm679_vm10 = vcmask 195584  }
  0x15   :  { %s1337_s3 = sld [smem:[#allocation13_spill]]  ;;  %v869_v33 = vld [vmem:[%s1305_s6] ss:$0 sm:$0xff]  ;;  %s710_s23 = sshll.u32 %s1319_s20, 4  ;;  %s711_s23 = int_to_ptr.hbm [resolvable:$true] %s710_s23 }
  0x16   :  { %s1338_s24 = sld [smem:[#allocation12_spill]] }
  0x18   :  { %208 = vmatpush.bf16.msra.mxu3 %v848_v18  ;;  %v871_v18 = vld [vmem:[%s1309_s10] ss:$0 sm:$0xff] }
  0x19   :  { %v845_v5 = vld [vmem:[%s1335_s5 + $0x8] sm:$0xff]  ;;  %v844_v6 = vld [vmem:[%s1335_s5] sm:$0xff] }
  0x1a   :  { %133 = vmatpush.bf16.msra.mxu1 %v845_v5  ;;  %v867_v8 = vld [vmem:[%s1336_s2] ss:$0 sm:$0xff] }
  0x1b   :  { %v847_v15 = vld [vmem:[%s1337_s3 + $0x8] sm:$0xff]  ;;  %v846_v17 = vld [vmem:[%s1337_s3] sm:$0xff] }
  0x1c   :  { %173 = vmatpush.bf16.msra.mxu2 %v847_v15  ;;  %v868_v20 = vld [vmem:[%s1338_s24] ss:$0 sm:$0xff] }
  0x1e   :  { %134 = vmatpush.bf16.msra.mxu1 %v844_v6 }
  0x20   :  { %174 = vmatpush.bf16.msra.mxu2 %v846_v17 }
  0x8f   :  { %v95_v7 = vpop.f32.mrf.mxu0 }
  0x90   :  { %v96_v9 = vadd.f32 %v867_v8, %v95_v7 }
  0x92   :  { %v100_v12 = vmax.f32 %v96_v9, 0.0 }
  0x97   :  { %v97_v10 = vpop.f32.mrf.mxu0 }
  0x98   :  { %v98_v11 = vadd.f32 %v867_v8, %v97_v10 }
  0x9a   :  { %v101_v13 = vmax.f32 %v98_v11, 0.0  ;;  %v851_v11 = vld [vmem:[%s1335_s5 + $0x18] sm:$0xff] }
  0x9b   :  { %348 = vmatpush.bf16.msrb.mxu1 %v851_v11 }
  0x9c   :  { %v102_v14 = vpack.c.bf16 %v101_v13, %v100_v12 }
  0x9e   :  { %749 = vmatmul.msk.bf16.vlgmr.msra.gmra.mxu1 %vm123_vm2, %v102_v14 }
 0x11b   :  { %v136_v19 = vpop.f32.mrf.mxu1 }
 0x11c   :  { %v137_v21 = vadd.f32 %v868_v20, %v136_v19 }
 0x11e   :  { %v141_v24 = vmax.f32 %v137_v21, 0.0 }
 0x123   :  { %v138_v22 = vpop.f32.mrf.mxu1 }
 0x124   :  { %v139_v23 = vadd.f32 %v868_v20, %v138_v22 }
 0x126   :  { %v142_v25 = vmax.f32 %v139_v23, 0.0  ;;  %v872_v23 = vld [vmem:[%s1310_s11] ss:$0 sm:$0xff] }
 0x128   :  { %v143_v26 = vpack.c.bf16 %v142_v25, %v141_v24 }
 0x12a   :  { %758 = vmatmul.msk.bf16.vlgmr.msra.gmra.mxu2 %vm123_vm2, %v143_v26  ;;  %767 = vmatmul.msk.bf16.vlgmr.msra.gmra.mxu3 %vm123_vm2, %v143_v26 }
 0x1ad   :  { %v210_v28 = vpop.f32.mrf.mxu3  ;;  %v176_v30 = vpop.f32.mrf.mxu2 }
 0x1ae   :  { %v1111_v29 = vadd.f32 %v870_v27, %v210_v28  ;;  %v177_v37 = vadd.f32 %v869_v33, %v176_v30 }
 0x1b0   :  { %v217_v31 = vsub.f32 0.0, %v1111_v29  ;;  %v215_v41 = vsub.f32 %v70_v1, %v177_v37  ;;  %v768_v1 = vld [vmem:[%s1333_s26 + $0x4] sm:$0xf]  ;;  %v873_v37 = vld [vmem:[%s1336_s2 + $0x1] ss:$0 sm:$0xff] }
 0x1b1   :  { %v298_v4 = vsel %vm82_vm0, %v768_v1, 0 }
 0x1b2   :  { %v219_v32 = vmul.f32 1.442695, %v217_v31  ;;  %307 = vmatpush.bf16.msrb.mxu0 %v298_v4  ;;  %v875_v4 = vld [vmem:[%s1305_s6 + $0x1] ss:$0 sm:$0xff] }
 0x1b4   :  { %883 = vpow2.f32 %v219_v32  ;;  %v850_v32 = vld [vmem:[%s1335_s5 + $0x10] sm:$0xff] }
 0x1b5   :  { %v212_v34 = vpop.f32.mrf.mxu3  ;;  %v178_v38 = vpop.f32.mrf.mxu2  ;;  %349 = vmatpush.bf16.msrb.mxu1 %v850_v32 }
 0x1b6   :  { %v1119_v35 = vadd.f32 %v870_v27, %v212_v34  ;;  %v179_v42 = vadd.f32 %v869_v33, %v178_v38  ;;  %v855_v33 = vld [vmem:[%s1306_s7 + $0x18] sm:$0xff] }
 0x1b7   :  { %426 = vmatpush.bf16.msrb.mxu3 %v855_v33 }
 0x1b8   :  { %v218_v36 = vsub.f32 0.0, %v1119_v35  ;;  %v216_v44 = vsub.f32 %v71_v2, %v179_v42 }
 0x1ba   :  { %v221_v39 = vmul.f32 1.442695, %v218_v36  ;;  %v884_v40 = vpop.eup %883 }
 0x1bb   :  { %v223_v43 = vmul.f32 %v884_v40, %v215_v41 }
 0x1bc   :  { %885 = vpow2.f32 %v221_v39 }
 0x1bd   :  { %v234_v46 = vmul.f32 %v223_v43, %v223_v43  ;;  %v225_v48 = vsel %vm78_vm1, %v223_v43, 0.0 }
 0x1bf   :  { %v236_v52 = vsel %vm78_vm1, %v234_v46, 0.0  ;;  %v852_v46 = vld [vmem:[%s1337_s3 + $0x10] sm:$0xff] }
 0x1c2   :  { %v886_v45 = vpop.eup %885 }
 0x1c3   :  { %v224_v47 = vmul.f32 %v886_v45, %v216_v44  ;;  %v854_v44 = vld [vmem:[%s1306_s7 + $0x10] sm:$0xff]  ;;  %v853_v45 = vld [vmem:[%s1337_s3 + $0x18] sm:$0xff] }
 0x1c4   :  { %427 = vmatpush.bf16.msrb.mxu3 %v854_v44  ;;  %390 = vmatpush.bf16.msrb.mxu2 %v853_v45 }
 0x1c5   :  { %v226_v49 = vsel %vm78_vm1, %v224_v47, 0.0  ;;  %v235_v50 = vmul.f32 %v224_v47, %v224_v47 }
 0x1c6   :  { %v227_v51 = vadd.f32 %v226_v49, %v225_v48  ;;  %v874_v48 = vld [vmem:[%s1338_s24 + $0x1] ss:$0 sm:$0xff] }
 0x1c7   :  { %v237_v53 = vsel %vm78_vm1, %v235_v50, 0.0 }
 0x1c8   :  { %v228_v54 = vrot.slane %v227_v51, 4  ;;  %v238_v55 = vadd.f32 %v237_v53, %v236_v52  ;;  %391 = vmatpush.bf16.msrb.mxu2 %v852_v46 }
 0x1ca   :  { %v229_v56 = vadd.f32 %v228_v54, %v227_v51  ;;  %v239_v57 = vrot.slane %v238_v55, 4 }
 0x1cc   :  { %v230_v58 = vrot.slane %v229_v56, 2  ;;  %v240_v59 = vadd.f32 %v239_v57, %v238_v55  ;;  %v277_v57 = vld [vmem:[%s1308_s9] sm:$0x1] }
 0x1ce   :  { %v231_v60 = vadd.f32 %v230_v58, %v229_v56  ;;  %v241_v61 = vrot.slane %v240_v59, 2 }
 0x1d0   :  { %v232_v62 = vrot.slane %v231_v60, 1  ;;  %v242_v63 = vadd.f32 %v241_v61, %v240_v59 }
 0x1d2   :  { %v233_v0 = vadd.f32 %v232_v62, %v231_v60  ;;  %v243_v2 = vrot.slane %v242_v63, 1  ;;  %v876_v60 = vld [vmem:[%s1307_s8 + $0x1] ss:$0 sm:$0xff] }
 0x1d4   :  { %v245_v3 = vmul.f32 0.0625, %v233_v0  ;;  %v244_v6 = vadd.f32 %v243_v2, %v242_v63 }
 0x1d6   :  { %v246_v5 = vmul.f32 16.0, %v245_v3  ;;  %v263_v16 = vsub.f32 %v224_v47, %v245_v3  ;;  %v262_v17 = vsub.f32 %v223_v43, %v245_v3 }
 0x1d8   :  { %v247_v7 = vmul.f32 %v246_v5, %v245_v3  ;;  %v267_v21 = vmul.f32 %v871_v18, %v262_v17  ;;  %v268_v22 = vmul.f32 %v871_v18, %v263_v16 }
 0x1da   :  { %v248_v8 = vsub.f32 %v244_v6, %v247_v7 }
 0x1dc   :  { %v249_v9 = vmul.f32 0.06666667, %v248_v8 }
 0x1de   :  { %v250_v10 = vadd.f32 1e-05, %v249_v9 }
 0x1e0   :  { %887 = vrsqrt.f32 %v250_v10  ;;  %vm257_vm4 = vweird.f32 %v250_v10 }
 0x1e6   :  { %v888_v12 = vpop.eup %887 }
 0x1e7   :  { %v252_v13 = vmul.f32 %v888_v12, %v250_v10  ;;  %vm258_vm3 = vweird.f32 %v888_v12 }
 0x1e8   :  { %vm259_vm5 = vmor %vm257_vm4, %vm258_vm3 }
 0x1e9   :  { %v253_v14 = vmul.f32 %v888_v12, %v252_v13 }
 0x1eb   :  { %v254_v15 = vmul.f32 0.5, %v253_v14 }
 0x1ed   :  { %v255_v19 = vsub.f32 1.5, %v254_v15 }
 0x1ef   :  { %v256_v20 = vmul.f32 %v888_v12, %v255_v19 }
 0x1f1   :  { %v260_v24 = vsel %vm259_vm5, %v888_v12, %v256_v20 }
 0x1f2   :  { %v269_v25 = vmul.f32 %v267_v21, %v260_v24  ;;  %v270_v26 = vmul.f32 %v268_v22, %v260_v24  ;;  %889 = vlog2.f32 %v260_v24 }
 0x1f4   :  { %v1141_v27 = vadd.f32 %v872_v23, %v269_v25  ;;  %v1143_v28 = vadd.f32 %v872_v23, %v270_v26 }
 0x1f6   :  { %v286_v30 = vpack.c.bf16 %v1143_v28, %v1141_v27 }
 0x1f8   :  { %770 = vmatmul.msk.bf16.vlgmr.msrb.gmra.mxu0 %vm78_vm1, %v286_v30  ;;  %v890_v55 = vpop.eup %889 }
 0x1f9   :  { %v279_v56 = vmul.f32 0.6931472, %v890_v55 }
 0x1fb   :  { %v280_v58 = vadd.f32 %v279_v56, %v277_v57 }
 0x1fd   :  { %v282_v59 = vperm.slane %v280_v58, 0 }
 0x1ff   :  { %v1180_v62 = vadd.f32 %v282_v59, %v217_v31  ;;  %v1192_v6 = vadd.f32 %v282_v59, %v218_v36  ;;  %v511_v31 = vld [vmem:[%s1311_s12] sm:$0xf] }
 0x200   :  { %v520_v7 = vsel %vm82_vm0, %v511_v31, 0  ;;  %v878_v59 = vld [vmem:[%s1310_s11 + $0x1] ss:$0 sm:$0xff] }
 0x201   :  { %529 = vmatpush.bf16.msra.mxu0 %v520_v7  ;;  %v815_v31 = vld [vmem:[%s1308_s9 + $0x1] sm:$0x1] }
 0x275   :  { %v309_v34 = vpop.f32.mrf.mxu0 }
 0x276   :  { %v310_v38 = vadd.f32 %v873_v37, %v309_v34 }
 0x278   :  { %v314_v41 = vmax.f32 %v310_v38, 0.0 }
 0x27d   :  { %v311_v39 = vpop.f32.mrf.mxu0 }
 0x27e   :  { %v312_v40 = vadd.f32 %v873_v37, %v311_v39 }
 0x280   :  { %v315_v42 = vmax.f32 %v312_v40, 0.0 }
 0x282   :  { %v316_v43 = vpack.c.bf16 %v315_v42, %v314_v41 }
 0x284   :  { %784 = vmatmul.msk.bf16.vlgmr.msrb.gmra.mxu1 %vm123_vm2, %v316_v43 }
 0x301   :  { %v351_v47 = vpop.f32.mrf.mxu1 }
 0x302   :  { %v352_v49 = vadd.f32 %v874_v48, %v351_v47 }
 0x304   :  { %v356_v52 = vmax.f32 %v352_v49, 0.0 }
 0x309   :  { %v353_v50 = vpop.f32.mrf.mxu1 }
 0x30a   :  { %v354_v51 = vadd.f32 %v874_v48, %v353_v50 }
 0x30c   :  { %v357_v53 = vmax.f32 %v354_v51, 0.0 }
 0x30e   :  { %v358_v54 = vpack.c.bf16 %v357_v53, %v356_v52 }
 0x310   :  { %798 = vmatmul.msk.bf16.vlgmr.msrb.gmra.mxu2 %vm123_vm2, %v358_v54  ;;  %812 = vmatmul.msk.bf16.vlgmr.msrb.gmra.mxu3 %vm123_vm2, %v358_v54  ;;  %v877_v54 = vld [vmem:[%s1309_s10 + $0x1] ss:$0 sm:$0xff]  ;;  %s955_s10 = smov 16  }
 0x393   :  { %v429_v61 = vpop.f32.mrf.mxu3  ;;  %v393_v0 = vpop.f32.mrf.mxu2 }
 0x394   :  { %v1182_v63 = vadd.f32 %v876_v60, %v429_v61  ;;  %v394_v10 = vadd.f32 %v875_v4, %v393_v0 }
 0x396   :  { %v436_v1 = vsub.f32 0.0, %v1182_v63  ;;  %v444_v2 = vsub.f32 %v1180_v62, %v1182_v63  ;;  %v434_v12 = vsub.f32 %v1141_v27, %v394_v10  ;;  %v856_v62 = vld [vmem:[%s1313_s14] sm:$0xff]  ;;  %v861_v63 = vld [vmem:[%s1317_s18 + $0x8] sm:$0xff] }
 0x397   :  { %642 = vmatpush.bf16.msra.mxu3 %v861_v63 }
 0x398   :  { %v438_v3 = vmul.f32 1.442695, %v436_v1 }
 0x39a   :  { %891 = vpow2.f32 %v438_v3 }
 0x39b   :  { %v431_v5 = vpop.f32.mrf.mxu3  ;;  %v395_v11 = vpop.f32.mrf.mxu2 }
 0x39c   :  { %v1194_v29 = vadd.f32 %v876_v60, %v431_v5  ;;  %v396_v13 = vadd.f32 %v875_v4, %v395_v11 }
 0x39e   :  { %v437_v8 = vsub.f32 0.0, %v1194_v29  ;;  %v445_v9 = vsub.f32 %v1192_v6, %v1194_v29  ;;  %v435_v15 = vsub.f32 %v1143_v28, %v396_v13  ;;  %v879_v6 = vld [vmem:[%s1312_s13] ss:$0 sm:$0xff] }
 0x3a0   :  { %v440_v35 = vmul.f32 1.442695, %v437_v8  ;;  %v892_v36 = vpop.eup %891 }
 0x3a1   :  { %v442_v14 = vmul.f32 %v892_v36, %v434_v12  ;;  %v857_v36 = vld [vmem:[%s1313_s14 + $0x8] sm:$0xff] }
 0x3a2   :  { %893 = vpow2.f32 %v440_v35  ;;  %568 = vmatpush.bf16.msra.mxu1 %v857_v36 }
 0x3a3   :  { %v455_v17 = vmul.f32 %v442_v14, %v442_v14  ;;  %v446_v19 = vsel %vm78_vm1, %v442_v14, 0.0 }
 0x3a5   :  { %v457_v23 = vsel %vm78_vm1, %v455_v17, 0.0  ;;  %v859_v17 = vld [vmem:[%s1315_s16 + $0x8] sm:$0xff] }
 0x3a6   :  { %569 = vmatpush.bf16.msra.mxu1 %v856_v62  ;;  %608 = vmatpush.bf16.msra.mxu2 %v859_v17 }
 0x3a8   :  { %v894_v16 = vpop.eup %893 }
 0x3a9   :  { %v443_v18 = vmul.f32 %v894_v16, %v435_v15  ;;  %v860_v16 = vld [vmem:[%s1317_s18] sm:$0xff] }
 0x3aa   :  { %643 = vmatpush.bf16.msra.mxu3 %v860_v16 }
 0x3ab   :  { %v447_v20 = vsel %vm78_vm1, %v443_v18, 0.0  ;;  %v456_v21 = vmul.f32 %v443_v18, %v443_v18 }
 0x3ac   :  { %v448_v22 = vadd.f32 %v447_v20, %v446_v19  ;;  %v880_v20 = vld [vmem:[%s1314_s15] ss:$0 sm:$0xff] }
 0x3ad   :  { %v458_v24 = vsel %vm78_vm1, %v456_v21, 0.0 }
 0x3ae   :  { %v449_v25 = vrot.slane %v448_v22, 4  ;;  %v459_v26 = vadd.f32 %v458_v24, %v457_v23 }
 0x3b0   :  { %v450_v27 = vadd.f32 %v449_v25, %v448_v22  ;;  %v460_v30 = vrot.slane %v459_v26, 4 }
 0x3b2   :  { %v451_v32 = vrot.slane %v450_v27, 2  ;;  %v461_v33 = vadd.f32 %v460_v30, %v459_v26 }
 0x3b4   :  { %v452_v28 = vadd.f32 %v451_v32, %v450_v27  ;;  %v462_v34 = vrot.slane %v461_v33, 2 }
 0x3b6   :  { %v453_v37 = vrot.slane %v452_v28, 1  ;;  %v463_v38 = vadd.f32 %v462_v34, %v461_v33  ;;  %v882_v34 = vld [vmem:[%s1318_s19] ss:$0 sm:$0xff]  ;;  %s957_s19 = smov [#allocation4]  }
 0x3b7   :  { %s721_s12 = sshll.u32 %s957_s19, 4  ;;  %s722_s12 = int_to_ptr.vmem [resolvable:$true] %s721_s12 }
 0x3b8   :  { %v454_v39 = vadd.f32 %v453_v37, %v452_v28  ;;  %v464_v40 = vrot.slane %v463_v38, 1 }
 0x3ba   :  { %v466_v41 = vmul.f32 0.0625, %v454_v39  ;;  %v465_v43 = vadd.f32 %v464_v40, %v463_v38 }
 0x3bc   :  { %v467_v42 = vmul.f32 16.0, %v466_v41  ;;  %v485_v52 = vsub.f32 %v443_v18, %v466_v41  ;;  %v484_v53 = vsub.f32 %v442_v14, %v466_v41  ;;  %v858_v18 = vld [vmem:[%s1315_s16] sm:$0xff] }
 0x3bd   :  { %609 = vmatpush.bf16.msra.mxu2 %v858_v18 }
 0x3be   :  { %v468_v44 = vmul.f32 %v467_v42, %v466_v41  ;;  %v489_v57 = vmul.f32 %v877_v54, %v484_v53  ;;  %v490_v58 = vmul.f32 %v877_v54, %v485_v52 }
 0x3c0   :  { %v469_v45 = vsub.f32 %v465_v43, %v468_v44 }
 0x3c2   :  { %v470_v46 = vmul.f32 0.06666667, %v469_v45  ;;  %v881_v45 = vld [vmem:[%s1316_s17] ss:$0 sm:$0xff]  ;;  %s958_s17 = smov 128  }
 0x3c4   :  { %v471_v47 = vadd.f32 1e-05, %v470_v46 }
 0x3c6   :  { %895 = vrsqrt.f32 %v471_v47  ;;  %vm478_vm7 = vweird.f32 %v471_v47 }
 0x3cc   :  { %v896_v48 = vpop.eup %895 }
 0x3cd   :  { %v473_v49 = vmul.f32 %v896_v48, %v471_v47  ;;  %vm479_vm6 = vweird.f32 %v896_v48 }
 0x3ce   :  { %vm480_vm8 = vmor %vm478_vm7, %vm479_vm6 }
 0x3cf   :  { %v474_v50 = vmul.f32 %v896_v48, %v473_v49 }
 0x3d1   :  { %v475_v51 = vmul.f32 0.5, %v474_v50 }
 0x3d3   :  { %v476_v55 = vsub.f32 1.5, %v475_v51 }
 0x3d5   :  { %v477_v56 = vmul.f32 %v896_v48, %v476_v55 }
 0x3d7   :  { %v481_v60 = vsel %vm480_vm8, %v896_v48, %v477_v56 }
 0x3d8   :  { %v491_v61 = vmul.f32 %v489_v57, %v481_v60  ;;  %v492_v0 = vmul.f32 %v490_v58, %v481_v60  ;;  %897 = vlog2.f32 %v481_v60 }
 0x3da   :  { %v1215_v1 = vadd.f32 %v878_v59, %v491_v61  ;;  %v1217_v3 = vadd.f32 %v878_v59, %v492_v0 }
 0x3dc   :  { %658 = vrot.lane.b32.xlu1 %v1215_v1, %s955_s10  ;;  %652 = vrot.lane.b32.xlu0 %v1215_v1, %s956_s22  ;;  %v510_v4 = vpack.c.bf16 %v1217_v3, %v1215_v1 }
 0x3de   :  { %v898_v5 = vpop.eup %897  ;;  %816 = vmatmul.msk.bf16.vlgmr.msra.gmra.mxu0 %vm78_vm1, %v510_v4 }
 0x3df   :  { %v503_v7 = vmul.f32 0.6931472, %v898_v5 }
 0x3e1   :  { %v504_v8 = vadd.f32 %v815_v31, %v503_v7 }
 0x3e3   :  { %v506_v10 = vperm.slane %v504_v8, 0 }
 0x3e4   :  { %660 = vrot.lane.b32.xlu1 %v1217_v3, %s955_s10  ;;  %654 = vrot.lane.b32.xlu0 %v1217_v3, %s956_s22 }
 0x3e5   :  { %v508_v11 = vadd.f32 %v506_v10, %v444_v2  ;;  %v1238_v35 = vadd.f32 %v506_v10, %v445_v9 }
 0x3e7   :  { %684 = vrot.lane.b32.xlu2 %v508_v11, %s956_s22 }
 0x3ec   :  { %692 = vrot.lane.b32.xlu1 %v1238_v35, %s955_s10  ;;  %690 = vrot.lane.b32.xlu0 %v508_v11, %s955_s10  ;;  %s723_s10 = sshll.u32 %s1320_s21, 4  ;;  %s959_s21 = smov [#allocation2]   ;;  %s724_s10 = int_to_ptr.hbm [resolvable:$true] %s723_s10 }
 0x3ed   :  { %s708_s11 = sshll.u32 %s959_s21, 4  ;;  %s709_s11 = int_to_ptr.vmem [resolvable:$true] %s708_s11 }
 0x3ef   :  { %686 = vrot.lane.b32.xlu2 %v1238_v35, %s956_s22 }
 0x441   :  { %v685_v33 = vpop.permute.xlu2 %684 }
 0x442   :  { %v696_v39 = vsel %vm78_vm1, %v508_v11, %v685_v33 }
 0x449   :  { %v687_v47 = vpop.permute.xlu2 %686 }
 0x44a   :  { %v697_v52 = vsel %vm78_vm1, %v1238_v35, %v687_v47 }
 0x44e   :  { %v653_v27 = vpop.permute.xlu0 %652  ;;  %v659_v30 = vpop.permute.xlu1 %658 }
 0x44f   :  { %v664_v49 = vsel %vm78_vm1, %v1215_v1, %v653_v27 }
 0x450   :  { %v667_v55 = vsel %vm666_vm9, %v664_v49, %v659_v30 }
 0x456   :  { %v655_v32 = vpop.permute.xlu0 %654  ;;  %v661_v28 = vpop.permute.xlu1 %660 }
 0x457   :  { %v665_v1 = vsel %vm78_vm1, %v1217_v3, %v655_v32 }
 0x458   :  { %v668_v5 = vsel %vm666_vm9, %v665_v1, %v661_v28 }
 0x45b   :  { %v531_v2 = vpop.f32.mrf.mxu0 }
 0x45c   :  { %v532_v29 = vadd.f32 %v879_v6, %v531_v2 }
 0x45e   :  { %v536_v13 = vmax.f32 %v532_v29, 0.0  ;;  %v691_v37 = vpop.permute.xlu0 %690  ;;  %v693_v48 = vpop.permute.xlu1 %692 }
 0x45f   :  { %v698_v41 = vsel %vm666_vm9, %v696_v39, %v691_v37  ;;  %v699_v54 = vsel %vm666_vm9, %v697_v52, %v693_v48 }
 0x463   :  { %v533_v9 = vpop.f32.mrf.mxu0 }
 0x464   :  { %v534_v12 = vadd.f32 %v879_v6, %v533_v9 }
 0x466   :  { %v537_v14 = vmax.f32 %v534_v12, 0.0 }
 0x468   :  { %v538_v15 = vpack.c.bf16 %v537_v14, %v536_v13 }
 0x46a   :  { %825 = vmatmul.msk.bf16.vlgmr.msra.gmra.mxu1 %vm123_vm2, %v538_v15 }
 0x4e7   :  { %v571_v19 = vpop.f32.mrf.mxu1 }
 0x4e8   :  { %v572_v21 = vadd.f32 %v880_v20, %v571_v19 }
 0x4ea   :  { %v576_v24 = vmax.f32 %v572_v21, 0.0 }
 0x4ef   :  { %v573_v22 = vpop.f32.mrf.mxu1 }
 0x4f0   :  { %v574_v23 = vadd.f32 %v880_v20, %v573_v22 }
 0x4f2   :  { %v577_v25 = vmax.f32 %v574_v23, 0.0 }
 0x4f4   :  { %v578_v26 = vpack.c.bf16 %v577_v25, %v576_v24 }
 0x4f6   :  { %834 = vmatmul.msk.bf16.vlgmr.msra.gmra.mxu2 %vm123_vm2, %v578_v26  ;;  %843 = vmatmul.msk.bf16.vlgmr.msra.gmra.mxu3 %vm123_vm2, %v578_v26 }
 0x579   :  { %v645_v38 = vpop.f32.mrf.mxu3  ;;  %v611_v42 = vpop.f32.mrf.mxu2 }
 0x57a   :  { %v646_v40 = vadd.f32 %v882_v34, %v645_v38  ;;  %v612_v50 = vadd.f32 %v881_v45, %v611_v42 }
 0x57c   :  { %v671_v43 = vsub.f32 0.0, %v646_v40  ;;  %v700_v44 = vsub.f32 %v698_v41, %v646_v40  ;;  %v669_v58 = vsub.f32 %v667_v55, %v612_v50 }
 0x57e   :  { %v673_v46 = vmul.f32 1.442695, %v671_v43  ;;  %702 = vst.msk [vmem:[#allocation4] sm:$0xff] %vm679_vm10, %v700_v44 }
 0x580   :  { %899 = vpow2.f32 %v673_v46 }
 0x581   :  { %v647_v51 = vpop.f32.mrf.mxu3  ;;  %v613_v60 = vpop.f32.mrf.mxu2 }
 0x582   :  { %v648_v53 = vadd.f32 %v882_v34, %v647_v51  ;;  %v614_v4 = vadd.f32 %v881_v45, %v613_v60 }
 0x584   :  { %v672_v56 = vsub.f32 0.0, %v648_v53  ;;  %v701_v57 = vsub.f32 %v699_v54, %v648_v53  ;;  %v670_v31 = vsub.f32 %v668_v5, %v614_v4 }
 0x586   :  { %v900_v59 = vpop.eup %899  ;;  %v675_v61 = vmul.f32 1.442695, %v672_v56  ;;  %703 = vst.msk [vmem:[#allocation4 + $0x8] sm:$0xff] %vm679_vm10, %v701_v57 }
 0x587   :  { %v677_v0 = vmul.f32 %v900_v59, %v669_v58  ;;  %729 = dma.vmem_to_hbm [thread:$0]  %s722_s12, 256, %s724_s10, [#allocation5], %s958_s17, %s958_s17, %s956_s22  }
 0x588   :  { %901 = vpow2.f32 %v675_v61 }
 0x589   :  { %680 = vst.msk [vmem:[#allocation2] sm:$0xff] %vm679_vm10, %v677_v0 }
 0x58e   :  { %v902_v7 = vpop.eup %901 }
 0x58f   :  { %v678_v8 = vmul.f32 %v902_v7, %v670_v31 }
 0x591   :  { %681 = vst.msk [vmem:[#allocation2 + $0x8] sm:$0xff] %vm679_vm10, %v678_v8 }
 0x592   :  { %716 = dma.vmem_to_hbm [thread:$0]  %s709_s11, 256, %s711_s23, [#allocation3], %s958_s17, %s958_s17, %s956_s22  }
 0x593   :  { %951 = dma.done.wait [#allocation3], 256  }
 0x594   :  { %952 = vsyncadd [#allocation3], 4294967040 }
 0x595   :  { %953 = dma.done.wait [#allocation5], 256  }
 0x596   :  { %954 = vsyncadd [#allocation5], 4294967040 }
 0x597   :  { %738 = vsyncpa [#allocation3], 1 }
 0x598   :  { %739 = vsyncpa [#allocation5], 1 }

</bundles_post_ra>
